<compile_context>
chip_gen: v7x
topology: tpu7x:2x2x1
jax: 0.10.0
libtpu: 0.0.40
codegen_flags: <defaults>
</compile_context>

<pallas_src>
import jax
import jax.numpy as jnp
import numpy as np
from jax import lax
from jax.experimental import pallas as pl
from jax.experimental.pallas import tpu as pltpu


def _round_up(v, m):
    return (v + m - 1) // m * m


def _vmem_caps():
    """(tile_budget_bytes, physical_vmem_bytes) for the local TPU generation."""
    cap = 64 * 1024 * 1024          # conservative default (v7x per-core VMEM)
    try:
        info = pltpu.get_tpu_info()
        cap = int(getattr(info, "vmem_capacity_bytes", cap))
    except Exception:
        pass
    return int(cap * 0.40), cap


def _choose_s_tile(S, nc_pad, no_pad, itemsize, budget, max_tile=4096):
    """Largest lane-dense (multiple-of-128) S tile that fits the VMEM budget."""
    fixed = (nc_pad * nc_pad * 4            # gram accumulator (f32 scratch)
             + no_pad * nc_pad * itemsize    # fused-matrix scratch
             + 2 * (no_pad * nc_pad * 4      # conv-weight block (double buffered)
                    + nc_pad * nc_pad * 4    # mask block
                    + no_pad * 128 * 4)      # bias block (lane padded)
             + (1 << 20))                    # slack for compiler temporaries
    per_col = 2 * (nc_pad + no_pad) * itemsize   # x + out tiles, double buffered
    t = max(budget - fixed, 0) // max(per_col, 1)
    t = (t // 128) * 128
    t = max(128, min(t, max_tile, _round_up(S, 128)))
    return int(t)


def _chn_attn_kernel(x_ref, w_ref, mask_ref, b_ref, o_ref, gram_acc, fused_scr):
    # x_ref:     (NC, tS)  current S chunk of x, batches folded into sublanes
    # w_ref:     (NO, NC)  block-diagonal 1x1x1 conv weight (f32)
    # mask_ref:  (NC, NC)  additive mask: 0 within batch, -1e30 cross batch
    # b_ref:     (NO, 1)   bias (f32)
    # o_ref:     (NO, tS)  output tile (written in phase 1 only)
    # gram_acc:  (NC, NC)  f32 gram accumulator (persists across the grid)
    # fused_scr: (NO, NC)  softmax(x x^T) folded into the conv weights, x.dtype
    phase = pl.program_id(0)
    k = pl.program_id(1)
    n_s = pl.num_programs(1)
    is_gram = phase == 0

    @pl.when(is_gram & (k == 0))
    def _zero():
        gram_acc[...] = jnp.zeros_like(gram_acc)

    @pl.when(is_gram)
    def _accumulate():
        x = x_ref[...]
        # gram[c, d] += sum_s x[c, s] * x[d, s]  (contract the lane axis; no
        # transpose materialized)
        gram_acc[...] += lax.dot_general(
            x, x, dimension_numbers=(((1,), (1,)), ((), ())),
            preferred_element_type=jnp.float32)

    @pl.when(is_gram & (k == n_s - 1))
    def _finalize():
        logits = gram_acc[...] + mask_ref[...]
        m = jnp.max(logits, axis=-1, keepdims=True)
        p = jnp.exp(logits - m)
        denom = jnp.sum(p, axis=-1, keepdims=True)
        # EUP reciprocal (free slot) + one Newton step to stay at ~f32 accuracy.
        inv = pl.reciprocal(denom, approx=True)
        inv = inv * (2.0 - denom * inv)
        weights = p * inv                                          # (NC, NC)
        fused = jnp.dot(w_ref[...], weights,
                        preferred_element_type=jnp.float32)        # (NO, NC)
        fused_scr[...] = fused.astype(fused_scr.dtype)

    @pl.when(phase == 1)
    def _apply():
        out = jnp.dot(fused_scr[...], x_ref[...],
                      preferred_element_type=jnp.float32)          # (NO, tS)
        o_ref[...] = (out + b_ref[...]).astype(o_ref.dtype)


def s_chn_attention3d(x, conv_w, conv_b):
    """x: (N, C, X, Y, Z); conv_w: (O, C, 1, 1, 1); conv_b: (O,)."""
    N, C, X, Y, Z = x.shape
    S = X * Y * Z
    O = conv_w.shape[0]
    NC, NO = N * C, N * O
    itemsize = jnp.dtype(x.dtype).itemsize

    nc_pad = _round_up(NC, 8)
    no_pad = _round_up(NO, 8)

    budget, cap = _vmem_caps()
    tS = _choose_s_tile(S, nc_pad, no_pad, itemsize, budget)
    S_pad = _round_up(S, tS)          # pad S up to a multiple of tS (exact: see header)
    n_s = S_pad // tS

    # Batches folded into the sublane axis.
    x2 = x.reshape(NC, S)
    if S_pad != S:
        x2 = jnp.pad(x2, ((0, 0), (0, S_pad - S)))

    # Block-diagonal conv weight, tiled bias, cross-batch softmax mask (tiny).
    w2 = conv_w.reshape(O, C).astype(jnp.float32)
    w_big = jnp.kron(jnp.eye(N, dtype=jnp.float32), w2)                  # (NO, NC)
    b_big = jnp.tile(conv_b.reshape(O, 1).astype(jnp.float32), (N, 1))   # (NO, 1)
    batch_ids = jnp.repeat(jnp.arange(N, dtype=jnp.int32), C)
    mask = jnp.where(batch_ids[:, None] == batch_ids[None, :],
                     0.0, -1e30).astype(jnp.float32)                     # (NC, NC)

    # Advisory cost estimate for the XLA scheduler.
    flops = 2 * NC * NC * S_pad + 2 * NO * NC * S_pad + 2 * NO * NC * NC
    bytes_accessed = (2 * NC * S_pad * itemsize          # x streamed twice
                      + NO * S_pad * itemsize            # output written once
                      + (NO * NC + NC * NC + NO) * 4)    # weight / mask / bias
    cost = pl.CostEstimate(flops=int(flops), transcendentals=int(NC * NC),
                           bytes_accessed=int(bytes_accessed))

    # Generation-aware scoped-VMEM limit (estimated usage x2 + headroom).
    used = (2 * (nc_pad + no_pad) * tS * itemsize
            + nc_pad * nc_pad * 4 + no_pad * nc_pad * itemsize
            + 2 * (no_pad * nc_pad * 4 + nc_pad * nc_pad * 4 + no_pad * 128 * 4))
    vmem_limit = int(min(cap * 0.9, max(32 << 20, 2 * used + (8 << 20))))

    # Deepen x pipelining only when tiles are small and the chunk count large.
    x_spec_kwargs = {}
    if tS <= 256 and n_s >= 8:
        x_spec_kwargs = dict(pipeline_mode=pl.Buffered(3))

    out = pl.pallas_call(
        _chn_attn_kernel,
        out_shape=jax.ShapeDtypeStruct((NO, S_pad), x.dtype),
        grid=(2, n_s),   # (phase, S chunk); phase 0 = gram, phase 1 = apply
        in_specs=[
            pl.BlockSpec((NC, tS), lambda p, k: (0, k), **x_spec_kwargs),
            pl.BlockSpec((NO, NC), lambda p, k: (0, 0)),
            pl.BlockSpec((NC, NC), lambda p, k: (0, 0)),
            pl.BlockSpec((NO, 1), lambda p, k: (0, 0)),
        ],
        # Pinned to block 0 during phase 0 (never written back until phase 1
        # has filled it); phase 1 walks the blocks and writes each exactly once.
        out_specs=pl.BlockSpec((NO, tS), lambda p, k: (0, k * p)),
        scratch_shapes=[
            pltpu.VMEM((NC, NC), jnp.float32),   # gram accumulator
            pltpu.VMEM((NO, NC), x.dtype),       # fused (softmax x conv) matrix
        ],
        compiler_params=pltpu.CompilerParams(
            dimension_semantics=("arbitrary", "arbitrary"),
            vmem_limit_bytes=vmem_limit),
        cost_estimate=cost,
    )(x2, w_big, mask, b_big)

    if S_pad != S:
        out = out[:, :S]
    return out.reshape(N, O, X, Y, Z)


def reference(x, conv_w, conv_b):
    """Pure-JAX reference matching the PyTorch forward."""
    N, C, X, Y, Z = x.shape
    S = X * Y * Z
    O = conv_w.shape[0]
    x_flat = x.reshape(N, C, S)
    logits = jnp.einsum("ncs,nds->ncd", x_flat, x_flat)
    weights = jax.nn.softmax(logits, axis=-1)
    attn = jnp.einsum("ncd,nds->ncs", weights, x_flat)
    out = jnp.einsum("oc,ncs->nos", conv_w.reshape(O, C), attn) \
        + conv_b.reshape(1, O, 1)
    return out.reshape(N, O, X, Y, Z)


if __name__ == "__main__":
    # small shapes consistent with the module
    N, in_chn, out_chn = 2, 4, 8
    X = Y = Z = 4  # S = 64 (padded to one 128-lane tile inside the wrapper)

    key = jax.random.PRNGKey(0)
    kx, kw, kb = jax.random.split(key, 3)

    x = jax.random.normal(kx, (N, in_chn, X, Y, Z), dtype=jnp.float32)

    # deterministic Conv3d(in_chn, out_chn, kernel_size=1) params
    # (PyTorch-style uniform fan-in init, seeded)
    fan_in = float(in_chn)  # kernel_size = 1*1*1
    bound = 1.0 / np.sqrt(fan_in)
    conv_w = jax.random.uniform(kw, (out_chn, in_chn, 1, 1, 1),
                                minval=-bound, maxval=bound, dtype=jnp.float32)
    conv_b = jax.random.uniform(kb, (out_chn,),
                                minval=-bound, maxval=bound, dtype=jnp.float32)

    out = s_chn_attention3d(x, conv_w, conv_b)
    out = jax.block_until_ready(out)

    ref = reference(x, conv_w, conv_b)
    # 1e-4 tolerance: approx-reciprocal (+1 Newton refinement) softmax norm.
    np.testing.assert_allclose(np.asarray(out), np.asarray(ref),
                               rtol=1e-4, atol=1e-4)

    print("KERNEL_OK")
</pallas_src>

<mosaic_0001>
module attributes {stable_mosaic.version = 11 : i64} {
  func.func @_chn_attn_kernel(%arg0: i32, %arg1: i32, %arg2: memref<8x128xf32, #tpu.memory_space<vmem>>, %arg3: memref<16x8xf32, #tpu.memory_space<vmem>>, %arg4: memref<8x8xf32, #tpu.memory_space<vmem>>, %arg5: memref<16x1xf32, #tpu.memory_space<vmem>>, %arg6: memref<16x128xf32, #tpu.memory_space<vmem>>, %arg7: memref<8x8xf32, #tpu.memory_space<vmem>>, %arg8: memref<16x8xf32, #tpu.memory_space<vmem>>) attributes {dimension_semantics = [#tpu.dimension_semantics<arbitrary>, #tpu.dimension_semantics<arbitrary>], iteration_bounds = array<i64: 2, 1>, scalar_prefetch = 0 : i64, scratch_operands = 2 : i64, tpu.core_type = #tpu.core_type<tc>, window_params = [{transform_indices = @transform_0, window_bounds = array<i64: 8, 128>}, {pipeline_mode = #tpu.pipeline_mode<synchronous>, transform_indices = @transform_1, window_bounds = array<i64: 16, 8>}, {pipeline_mode = #tpu.pipeline_mode<synchronous>, transform_indices = @transform_2, window_bounds = array<i64: 8, 8>}, {pipeline_mode = #tpu.pipeline_mode<synchronous>, transform_indices = @transform_3, window_bounds = array<i64: 16, 1>}, {transform_indices = @transform_4, window_bounds = array<i64: 16, 128>}]} {
    %c0_i32 = arith.constant 0 : i32
    %0 = arith.cmpi eq, %arg0, %c0_i32 : i32
    %c0_i32_0 = arith.constant 0 : i32
    %1 = arith.cmpi eq, %arg1, %c0_i32_0 : i32
    %2 = arith.andi %0, %1 : i1
    %3 = arith.extui %2 : i1 to i32
    %c0_i32_1 = arith.constant 0 : i32
    %4 = arith.cmpi ne, %3, %c0_i32_1 : i32
    scf.if %4 {
      %cst = arith.constant 0.000000e+00 : f32
      %14 = vector.broadcast %cst : f32 to vector<8x8xf32>
      %c0 = arith.constant 0 : index
      %c0_6 = arith.constant 0 : index
      %15 = vector.load %arg7[%c0, %c0_6] : memref<8x8xf32, #tpu.memory_space<vmem>>, vector<8x8xf32>
      tpu.vector_store %arg7[%c0, %c0_6], %14 {strides = array<i32>} : memref<8x8xf32, #tpu.memory_space<vmem>>, vector<8x8xf32>,
    } else {
    }
    %5 = arith.extui %0 : i1 to i32
    %c0_i32_2 = arith.constant 0 : i32
    %6 = arith.cmpi ne, %5, %c0_i32_2 : i32
    scf.if %6 {
      %c0 = arith.constant 0 : index
      %c0_6 = arith.constant 0 : index
      %14 = vector.load %arg2[%c0, %c0_6] : memref<8x128xf32, #tpu.memory_space<vmem>>, vector<8x128xf32>
      %c0_7 = arith.constant 0 : index
      %c0_8 = arith.constant 0 : index
      %15 = vector.load %arg7[%c0_7, %c0_8] : memref<8x8xf32, #tpu.memory_space<vmem>>, vector<8x8xf32>
      %cst = arith.constant dense<0.000000e+00> : vector<8x8xf32>
      %16 = tpu.matmul %14, %14, %cst {dimension_numbers = #tpu.dot_dimension_numbers<[1], [1], [0], [0], [0, 0, 1, 0], [], []>} : vector<8x128xf32>, vector<8x128xf32>, vector<8x8xf32> -> vector<8x8xf32>
      %17 = arith.addf %15, %16 : vector<8x8xf32>
      %c0_9 = arith.constant 0 : index
      %c0_10 = arith.constant 0 : index
      %18 = vector.load %arg7[%c0_9, %c0_10] : memref<8x8xf32, #tpu.memory_space<vmem>>, vector<8x8xf32>
      tpu.vector_store %arg7[%c0_9, %c0_10], %17 {strides = array<i32>} : memref<8x8xf32, #tpu.memory_space<vmem>>, vector<8x8xf32>,
    } else {
    }
    %c0_i32_3 = arith.constant 0 : i32
    %7 = arith.cmpi eq, %arg1, %c0_i32_3 : i32
    %8 = arith.andi %0, %7 : i1
    %9 = arith.extui %8 : i1 to i32
    %c0_i32_4 = arith.constant 0 : i32
    %10 = arith.cmpi ne, %9, %c0_i32_4 : i32
    scf.if %10 {
      %c0 = arith.constant 0 : index
      %c0_6 = arith.constant 0 : index
      %14 = vector.load %arg7[%c0, %c0_6] : memref<8x8xf32, #tpu.memory_space<vmem>>, vector<8x8xf32>
      %c0_7 = arith.constant 0 : index
      %c0_8 = arith.constant 0 : index
      %15 = vector.load %arg4[%c0_7, %c0_8] : memref<8x8xf32, #tpu.memory_space<vmem>>, vector<8x8xf32>
      %16 = arith.addf %14, %15 : vector<8x8xf32>
      %cst = arith.constant dense<0xFF800000> : vector<8xf32>
      %17 = vector.multi_reduction <maximumf>, %16, %cst [1] : vector<8x8xf32> to vector<8xf32>
      %18 = vector.shape_cast %17 : vector<8xf32> to vector<8x1xf32>
      %19 = vector.broadcast %18 : vector<8x1xf32> to vector<8x8xf32>
      %20 = arith.subf %16, %19 : vector<8x8xf32>
      %21 = math.exp %20 : vector<8x8xf32>
      %cst_9 = arith.constant dense<0.000000e+00> : vector<8xf32>
      %22 = vector.multi_reduction <add>, %21, %cst_9 [1] : vector<8x8xf32> to vector<8xf32>
      %23 = vector.shape_cast %22 : vector<8xf32> to vector<8x1xf32>
      %24 = tpu.reciprocal %23 {approx = true} : vector<8x1xf32> -> vector<8x1xf32>
      %25 = arith.mulf %23, %24 : vector<8x1xf32>
      %cst_10 = arith.constant 2.000000e+00 : f32
      %26 = vector.broadcast %cst_10 : f32 to vector<8x1xf32>
      %27 = arith.subf %26, %25 : vector<8x1xf32>
      %28 = arith.mulf %24, %27 : vector<8x1xf32>
      %29 = vector.broadcast %28 : vector<8x1xf32> to vector<8x8xf32>
      %30 = arith.mulf %21, %29 : vector<8x8xf32>
      %c0_11 = arith.constant 0 : index
      %c0_12 = arith.constant 0 : index
      %31 = vector.load %arg3[%c0_11, %c0_12] : memref<16x8xf32, #tpu.memory_space<vmem>>, vector<16x8xf32>
      %cst_13 = arith.constant dense<0.000000e+00> : vector<16x8xf32>
      %32 = tpu.matmul %31, %30, %cst_13 {dimension_numbers = #tpu.dot_dimension_numbers<[1], [0], [0], [1], [0, 0, 1, 1], [], []>} : vector<16x8xf32>, vector<8x8xf32>, vector<16x8xf32> -> vector<16x8xf32>
      %c0_14 = arith.constant 0 : index
      %c0_15 = arith.constant 0 : index
      %33 = vector.load %arg8[%c0_14, %c0_15] : memref<16x8xf32, #tpu.memory_space<vmem>>, vector<16x8xf32>
      tpu.vector_store %arg8[%c0_14, %c0_15], %32 {strides = array<i32>} : memref<16x8xf32, #tpu.memory_space<vmem>>, vector<16x8xf32>,
    } else {
    }
    %c1_i32 = arith.constant 1 : i32
    %11 = arith.cmpi eq, %arg0, %c1_i32 : i32
    %12 = arith.extui %11 : i1 to i32
    %c0_i32_5 = arith.constant 0 : i32
    %13 = arith.cmpi ne, %12, %c0_i32_5 : i32
    scf.if %13 {
      %c0 = arith.constant 0 : index
      %c0_6 = arith.constant 0 : index
      %14 = vector.load %arg8[%c0, %c0_6] : memref<16x8xf32, #tpu.memory_space<vmem>>, vector<16x8xf32>
      %c0_7 = arith.constant 0 : index
      %c0_8 = arith.constant 0 : index
      %15 = vector.load %arg2[%c0_7, %c0_8] : memref<8x128xf32, #tpu.memory_space<vmem>>, vector<8x128xf32>
      %cst = arith.constant dense<0.000000e+00> : vector<16x128xf32>
      %16 = tpu.matmul %14, %15, %cst {dimension_numbers = #tpu.dot_dimension_numbers<[1], [0], [0], [1], [0, 0, 1, 1], [], []>} : vector<16x8xf32>, vector<8x128xf32>, vector<16x128xf32> -> vector<16x128xf32>
      %c0_9 = arith.constant 0 : index
      %c0_10 = arith.constant 0 : index
      %17 = vector.load %arg5[%c0_9, %c0_10] : memref<16x1xf32, #tpu.memory_space<vmem>>, vector<16x1xf32>
      %18 = vector.broadcast %17 : vector<16x1xf32> to vector<16x128xf32>
      %19 = arith.addf %16, %18 : vector<16x128xf32>
      %c0_11 = arith.constant 0 : index
      %c0_12 = arith.constant 0 : index
      %20 = vector.load %arg6[%c0_11, %c0_12] : memref<16x128xf32, #tpu.memory_space<vmem>>, vector<16x128xf32>
      tpu.vector_store %arg6[%c0_11, %c0_12], %19 {strides = array<i32>} : memref<16x128xf32, #tpu.memory_space<vmem>>, vector<16x128xf32>,
    } else {
    }
    return
  }
  func.func @transform_0(%arg0: i32, %arg1: i32) -> (i32, i32) {
    %c0_i32 = arith.constant 0 : i32
    %c0_i32_0 = arith.constant 0 : i32
    return %c0_i32, %arg1 : i32, i32
  }
  func.func @transform_1(%arg0: i32, %arg1: i32) -> (i32, i32) {
    %c0_i32 = arith.constant 0 : i32
    %c0_i32_0 = arith.constant 0 : i32
    %c0_i32_1 = arith.constant 0 : i32
    return %c0_i32, %c0_i32_0 : i32, i32
  }
  func.func @transform_2(%arg0: i32, %arg1: i32) -> (i32, i32) {
    %c0_i32 = arith.constant 0 : i32
    %c0_i32_0 = arith.constant 0 : i32
    %c0_i32_1 = arith.constant 0 : i32
    return %c0_i32, %c0_i32_0 : i32, i32
  }
  func.func @transform_3(%arg0: i32, %arg1: i32) -> (i32, i32) {
    %c0_i32 = arith.constant 0 : i32
    %c0_i32_0 = arith.constant 0 : i32
    %c0_i32_1 = arith.constant 0 : i32
    return %c0_i32, %c0_i32_0 : i32, i32
  }
  func.func @transform_4(%arg0: i32, %arg1: i32) -> (i32, i32) {
    %0 = arith.muli %arg1, %arg0 : i32
    %c0_i32 = arith.constant 0 : i32
    %c0_i32_0 = arith.constant 0 : i32
    return %c0_i32, %0 : i32, i32
  }
}

</mosaic_0001>

<bundles_post_ra>
// kernel: tpu_custom_call.1
= control target key start
LH: loop header
LB: loop body
LE: loop exit
PB: predicated region body
PF: predicated region fallthrough
CT: control target
= control target key end

     0   :  { %9 = vsyncpa [#allocation5], 0  ;;  %s854_s0 = inlined_call_operand.vmem [shape: f32[8,128], index: 0, kind: input, shape index: {}]   ;;  %s855_s1 = inlined_call_operand.vmem [shape: f32[16,8], index: 1, kind: input, shape index: {}]   ;;  %s856_s2 = inlined_call_operand.vmem [shape: f32[8,8], index: 2, kind: input, shape index: {}]   ;;  %s857_s3 = inlined_call_operand.vmem [shape: f32[16,1], index: 3, kind: input, shape index: {}]   ;;  %s858_s4 = inlined_call_operand.hbm [shape: f32[16,128], index: 4, kind: output, shape index: {}]  }
   0x1   :  { %11 = vsyncpa [#allocation5 + $0x1], 0  ;;  %s762_s15 = smov 0   ;;  %s764_s16 = smov 0  }
   0x2   :  { %s766_s17 = smov 0  }
   0x3 LB: > { %s589_s18 = sadd.s32 4294967295, %s728_s17   ;;  %s590_s19 = sadd.s32 4294967294, %s728_s17   ;;  %s728_s17 = sphi %s766_s17, %s17_s17   ;;  %s724_s16 = sphi %s764_s16, %s861_s16   ;;  %s720_s15 = sphi %s762_s15, %s860_s15  }
   0x4   : > { %s29_s20 = sadd.s32 1, %s724_s16  ;;  %p593_p0 = scmp.ge.s32.totalorder %s728_s17, 1 }
   0x5   : > { %p31_p1 = scmp.ge.s32.totalorder %s29_s20, 2  ;;  %p178_p2 = scmp.lt.s32.totalorder %s728_s17, 3 }
   0x7   : > { %s863_s20 = smov (%p31_p1, %s29_s20), 0  ;;  %p179_p3 = pnand %p593_p0, %p178_p2 }
   0x8   : > { %p208_p4 = scmp.eq.s32.totalorder (!%p179_p3), %s720_s15, 0 }
   0x9   : > { %182 = sbr.rel (%p179_p3) target bundleno = 1037 (0x40d), region = 36 }
  0x10   : > { %213 = sbr.rel (!%p208_p4) target bundleno = 23 (0x17), region = 40  ;;  %vm214_vm0 = vcmask (%p208_p4), 64512   ;;  %v730_v0 = vmov (%p208_p4), 0.0  }
  0x11   : > { %215 = vst.msk [vmem:[#allocation2] sm:$0xff] (%p208_p4), %vm214_vm0, %v730_v0 }
  0x17 PF: > { %p595_p5 = scmp.ne.s32.totalorder %s720_s15, 0 }
  0x18   : > { %v219_v1 = vld [vmem:[%s854_s0] sm:$0xff] (!%p595_p5)  ;;  %v731_v2 = vmov (!%p595_p5), 0.0   ;;  %vm732_vm1 = vmmov (!%p595_p5), 0   ;;  %vm292_vm2 = vcmask (!%p595_p5), 64512  }
  0x19   : > { %218 = sbr.rel (%p595_p5) target bundleno = 244 (0xf4), region = 44  ;;  %614 = vmatprep.subr.mxu0 (!%p595_p5), %v731_v2  ;;  %616 = vmatprep.mubr.msk.f32.mxu0 (!%p595_p5), %vm732_vm1, %v731_v2  ;;  %v220_v3 = vld [vmem:[#allocation2] sm:$0xff] (!%p595_p5) }
  0x1a   : > { %615 = vmatpush3.xpose.msra.mxu0 (!%p595_p5), %v219_v1 }
  0x1d   : > { %617 = vmatmul.mubr.f32.vlgmr.msra.gmra.mrb[0].mxu0 (!%p595_p5), %v219_v1 }
  0xf0   : > { %v287_v4 = vpop.f32.mrb[0].mxu0 }
  0xf1   : > { %v291_v5 = vadd.f32 %v287_v4, %v220_v3  ;;  %v618_v6 = vpop.f32.mrb[1].mxu0 }
  0xf3   : > { %293 = vst.msk [vmem:[#allocation2] sm:$0xff] %vm292_vm2, %v291_v5 }
  0xf4 PF: > { %295 = sbr.rel (!%p208_p4) target bundleno = 789 (0x315), region = 48  ;;  %v297_v8 = vld [vmem:[%s856_s2] sm:$0xff] (%p208_p4)  ;;  %vm299_vm3 = vcmask (%p208_p4), 64512   ;;  %v315_v23 = vld [vmem:[%s855_s1 + $0x8] sm:$0xff] (%p208_p4) }
  0xf5   : > { %v314_v16 = vld [vmem:[%s855_s1] sm:$0xff] (%p208_p4) }
  0xf6   : > { %621 = vmatprep.mubr.msk.f32.mxu0 (%p208_p4), %vm299_vm3, %v314_v16 }
  0xfa   : > { %v296_v7 = vld [vmem:[#allocation2] sm:$0xff] (%p208_p4) }
  0xfb   : > { %v298_v9 = vadd.f32 %v297_v8, %v296_v7 }
  0xfd   : > { %v300_v10 = vsel %vm299_vm3, %v298_v9, -inf }
  0xfe   : > { %301 = vmax.xlane.f32.xlu0 %v300_v10 }
 0x18b   : > { %v302_v11 = vpop.xlane.xlu0 %301 }
 0x18c   : > { %v303_v12 = vsub.f32 %v298_v9, %v302_v11 }
 0x18e   : > { %v304_v13 = vmul.f32 1.442695, %v303_v12 }
 0x190   : > { %671 = vpow2.f32 %v304_v13 }
 0x19a   : > { %v672_v14 = vpop.eup %671 }
 0x19b   : > { %v306_v15 = vsel %vm299_vm3, %v672_v14, 0.0 }
 0x19c   : > { %307 = vadd.xlane.f32.xlu0 %v306_v15 }
 0x229   : > { %v308_v17 = vpop.xlane.xlu0 %307 }
 0x22a   : > { %673 = vrcp.f32 %v308_v17 }
 0x234   : > { %v674_v18 = vpop.eup %673 }
 0x235   : > { %v310_v19 = vmul.f32 %v674_v18, %v308_v17 }
 0x237   : > { %v311_v20 = vsub.f32 2.0, %v310_v19 }
 0x239   : > { %v312_v21 = vmul.f32 %v674_v18, %v311_v20 }
 0x23b   : > { %v313_v22 = vmul.f32 %v672_v14, %v312_v21 }
 0x23d   : > { %619 = vmatprep.subr.mxu0 %v313_v22 }
 0x23e   : > { %620 = vmatpush3.msra.mxu0 %v313_v22 }
 0x23f   : > { %622 = vmatmul.mubr.msk.f32.vlgmr.msra.gmra.mrb[0].mxu0 %vm299_vm3, %v315_v23 }
 0x312   : > { %v623_v24 = vpop.f32.mrb[0].mxu0 }
 0x313   : > { %398 = vst.msk [vmem:[#allocation3 + $0x8] sm:$0xff] %vm299_vm3, %v623_v24  ;;  %v388_v25 = vpop.f32.mrb[1].mxu0 }
 0x314   : > { %397 = vst.msk [vmem:[#allocation3] sm:$0xff] %vm299_vm3, %v388_v25 }
 0x315 PF: > { %p598_p6 = scmp.ne.s32.totalorder %s720_s15, 1 }
 0x316   : > { %v405_v26 = vld [vmem:[%s854_s0] sm:$0xff] (!%p598_p6)  ;;  %vm418_vm4 = vcmask (!%p598_p6), 64512   ;;  %v733_v30 = vmov (!%p598_p6), 0   ;;  %v407_v31 = vld [vmem:[%s857_s3 + $0x8] sm:$0xff] (!%p598_p6) }
 0x317   : > { %402 = sbr.rel (%p598_p6) target bundleno = 1013 (0x3f5), region = 52  ;;  %624 = vmatprep.subr.mxu0 (!%p598_p6), %v405_v26  ;;  %v406_v29 = vld [vmem:[%s857_s3] sm:$0xff] (!%p598_p6)  ;;  %675 = vset.pattern.permute.xlu0 (!%p598_p6), %v733_v30 }
 0x318   : > { %625 = vmatpush3.msra.mxu0 (!%p598_p6), %v405_v26  ;;  %410 = vperm.xlu0 (!%p598_p6), %675, %v406_v29  }
 0x31a   : > { %v404_v28 = vld [vmem:[#allocation3 + $0x8] sm:$0xff] (!%p598_p6) }
 0x31b   : > { %v403_v27 = vld [vmem:[#allocation3] sm:$0xff] (!%p598_p6) }
 0x31c   : > { %626 = vmatprep.mubr.msk.f32.mxu0 (!%p598_p6), %vm418_vm4, %v403_v27  ;;  %415 = vperm.xlu0 (!%p598_p6), %675, %v407_v31  }
 0x31d   : > { %627 = vmatmul.mubr.msk.f32.vlgmr.msra.gmra.mrb[0].mxu0 (!%p598_p6), %vm418_vm4, %v404_v28 }
 0x397   : > { %v411_v32 = vpop.permute.xlu0 %410 }
 0x39b   : > { %v416_v33 = vpop.permute.xlu0 %415 }
 0x3f0   : > { %v628_v34 = vpop.f32.mrb[0].mxu0 }
 0x3f1   : > { %v497_v35 = vadd.f32 %v628_v34, %v416_v33  ;;  %v491_v36 = vpop.f32.mrb[1].mxu0 }
 0x3f2   : > { %v492_v37 = vadd.f32 %v491_v36, %v411_v32 }
 0x3f3   : > { %501 = vst [vmem:[#allocation4 + $0x8] sm:$0xff] %v497_v35 }
 0x3f4   : > { %500 = vst [vmem:[#allocation4] sm:$0xff] %v492_v37 }
 0x3f5 PF: > { %p820_p7 = scmp.eq.s32.totalorder %s589_s18, 1  ;;  %s734_s10 = smov [#allocation4]  }
 0x3f6   : > { %s516_s11 = sshll.u32 %s734_s10, 4  ;;  %s517_s11 = int_to_ptr.vmem [resolvable:$true] %s516_s11 }
 0x3f7   : > { %s676_s12 = scalar_lea.vmem %s517_s11, 256  ;;  %s682_s13 = scalar_lea.vmem %s517_s11, 512 }
 0x3f8   : > { %p677_p8 = scmp.ne.s32.totalorder %s517_s11, %s676_s12  ;;  %p683_p11 = scmp.lt.s32.totalorder %s517_s11, %s517_s11 }
 0x3f9   : > { %p684_p12 = scmp.lt.s32.totalorder %s682_s13, %s676_s12 }
 0x3fa   : > { %p678_p9 = pnand %p677_p8, %p820_p7 }
 0x3fb   : > { %p685_p13 = por %p684_p12, %p683_p11 }
 0x3fc   : > { %p679_p10 = pneg %p678_p9 }
 0x3fe   : > { %p686_p0 = pnand %p685_p13, %p679_p10 }
 0x400   : > { %689 = shalt.err (!%p686_p0)
}
 0x401   : > { %s690_s18 = scalar_lea.hbm %s858_s4, 256 }
 0x402   : > { %p691_p1 = scmp.ne.s32.totalorder %s858_s4, %s690_s18  ;;  %p696_p4 = scmp.lt.u32.totalorder %s690_s18, %s858_s4 }
 0x404   : > { %p692_p2 = pnand %p691_p1, %p820_p7 }
 0x406   : > { %p693_p3 = pneg %p692_p2 }
 0x408   : > { %p698_p5 = pnand %p696_p4, %p693_p3 }
 0x40a   : > { %701 = shalt.err (!%p698_p5)
}
 0x40b   : > { %s735_s25 = smov 128   ;;  %s736_s26 = smov 8  }
 0x40c   : > { %630 = dma.vmem_to_hbm [thread:$0]  (%p820_p7), %s517_s11, 256, %s858_s4, [#allocation5], %s735_s25, %s735_s25, %s736_s26  }
 0x40d PF: > { %p638_p6 = scmp.ge.s32.totalorder %s728_s17, 2  ;;  %p639_p8 = scmp.eq.s32.totalorder %s590_s19, 1 }
 0x40f   : > { %p634_p9 = pnand %p639_p8, %p638_p6 }
 0x411   : > { %715 = dma.done.wait (!%p634_p9), [#allocation5], 256  }
 0x412   : > { %717 = vsyncadd (!%p634_p9), [#allocation5], 4294967040  ;;  %s17_s17 = sadd.s32 1, %s728_s17   ;;  %s860_s15 = smov %s724_s16 }
 0x413   : > { %p14_p10 = scmp.ge.s32.totalorder %s17_s17, 4   ;;  %s861_s16 = smov %s863_s20 }
 0x415   :  { %16 = sbr.rel (!%p14_p10) target bundleno = 3 (0x3), region = 87 }
 0x41c   :  { %537 = vsyncpa [#allocation5], 1 }
 0x41d   :  { %539 = vsyncpa [#allocation5 + $0x1], 1 }

</bundles_post_ra>
